<compile_context>
chip_gen: v7x
topology: tpu7x:2x2x1
jax: 0.10.0
libtpu: 0.0.40
codegen_flags: <defaults>
</compile_context>

<pallas_src>
import functools

import jax
import jax.numpy as jnp
import numpy as np
from jax import lax
from jax.experimental import pallas as pl
from jax.experimental.pallas import tpu as pltpu


def _round_up(x, m):
    return ((x + m - 1) // m) * m


# ---------------------------------------------------------------------------
# Chip / VMEM awareness (generation-conditional tiling: ~64 MiB + 2 TCs on
# v7x, 128 MiB + 1 TC on v5e/v6e).  All queries are best-effort with safe
# fallbacks so the script always runs.
# ---------------------------------------------------------------------------
def _chip_info():
    vmem_cap = None
    num_cores = None
    try:
        info = pltpu.get_tpu_info()
        vmem_cap = int(getattr(info, "vmem_capacity_bytes", 0)) or None
        num_cores = int(getattr(info, "num_cores", 0)) or None
    except Exception:
        pass
    if vmem_cap is None:
        try:
            kind = jax.devices()[0].device_kind.lower()
            if "v7" in kind or "7x" in kind:
                vmem_cap = 64 << 20
        except Exception:
            pass
    if vmem_cap is None:
        vmem_cap = 128 << 20
    if num_cores is None:
        # v7x exposes ~64 MiB VMEM per TensorCore and 2 TCs/chip; 128 MiB parts
        # (v5e/v6e) have a single TC.
        num_cores = 2 if vmem_cap <= (96 << 20) else 1
    return vmem_cap, num_cores


def _vmem_limit(block_bytes, vmem_cap):
    """Scoped-VMEM limit derived from actual block bytes, clamped to the part."""
    need = int(block_bytes * 1.4) + (4 << 20)
    return int(min(max(32 << 20, need), int(vmem_cap * 0.9)))


def _const_block_spec(shape, index_map):
    """Single-buffer blocks whose block index never changes (pure VMEM savings)."""
    try:
        return pl.BlockSpec(shape, index_map, pipeline_mode=pl.Buffered(1))
    except Exception:  # older jax without pipeline_mode / Buffered
        return pl.BlockSpec(shape, index_map)


# ---------------------------------------------------------------------------
# Kernel 1: hoisted input projection  gates_x = x @ W_ih_t + bias  (bf16 out)
# ---------------------------------------------------------------------------
def _xproj_kernel(x_ref, w_ref, b_ref, o_ref):
    acc = jnp.dot(x_ref[...], w_ref[...], preferred_element_type=jnp.float32)
    # Bias add stays in f32; the bf16 rounding happens once, on the store.
    o_ref[...] = (acc + b_ref[...]).astype(o_ref.dtype)


def _input_projection(x2d_bf16, w_ih_t_bf16, bias_f32, tm, vmem_cap):
    M, d_in = x2d_bf16.shape
    G = w_ih_t_bf16.shape[1]
    block_bytes = (2 * tm * d_in * 2      # x tile, double-buffered, bf16
                   + 2 * tm * G * 2       # out tile, double-buffered, bf16
                   + 2 * d_in * G * 2     # weights (budgeted conservatively)
                   + 2 * G * 4)           # bias
    return pl.pallas_call(
        _xproj_kernel,
        out_shape=jax.ShapeDtypeStruct((M, G), jnp.bfloat16),
        grid_spec=pltpu.PrefetchScalarGridSpec(
            num_scalar_prefetch=0,
            grid=(M // tm,),
            in_specs=[
                pl.BlockSpec((tm, d_in), lambda m: (m, 0)),
                _const_block_spec((d_in, G), lambda m: (0, 0)),
                _const_block_spec((1, G), lambda m: (0, 0)),
            ],
            out_specs=pl.BlockSpec((tm, G), lambda m: (m, 0)),
        ),
        compiler_params=pltpu.CompilerParams(
            dimension_semantics=("parallel",),
            vmem_limit_bytes=_vmem_limit(block_bytes, vmem_cap)),
    )(x2d_bf16, w_ih_t_bf16, bias_f32)


# ---------------------------------------------------------------------------
# Kernel 2: serial recurrence over (batch-tile, time-chunk) slabs
# ---------------------------------------------------------------------------
def _recurrence_kernel(gx_ref, whh_ref, h0_ref, c0_ref, y_ref, hT_ref,
                       h_scr, c_scr, *, seq_len, t_chunk, h_pad, unroll):
    """Per grid step: one (batch-tile, time-chunk) slab.

    gx_ref:  [t_chunk, B_tile, 4*H_pad] bf16  precomputed x-projection (+ bias)
    whh_ref: [H_pad, 4*H_pad]           bf16  pre-transposed recurrent weights
    h0/c0:   [1, H_pad]                 f32   initial state (broadcast over batch)
    y_ref:   [t_chunk, B_tile, H_pad]   bf16  per-step hidden states
    hT_ref:  [B_tile, H_pad]            f32   final hidden state
    h/c carries stay f32 (cell-state accumulation precision).
    """
    t_blk = pl.program_id(1)
    n_t = pl.num_programs(1)
    b_tile = h_scr.shape[0]
    H = h_pad

    @pl.when(t_blk == 0)
    def _init():
        h_scr[...] = jnp.broadcast_to(h0_ref[...], (b_tile, H))
        c_scr[...] = jnp.broadcast_to(c0_ref[...], (b_tile, H))

    w = whh_ref[...]                      # resident bf16, no in-kernel transpose

    def run_chunk(masked):
        def step(i, carry):
            h, c = carry
            # Only the recurrent matmul sits on the serial critical path;
            # bf16 gx promotes to f32 for free on the VPU.
            gates = (gx_ref[i].astype(jnp.float32)
                     + jnp.dot(h.astype(w.dtype), w,
                               preferred_element_type=jnp.float32))
            # PyTorch gate order i, f, g, o; slices are 128-lane aligned (H_pad).
            i_g = jax.nn.sigmoid(gates[:, 0 * H:1 * H])
            f_g = jax.nn.sigmoid(gates[:, 1 * H:2 * H])
            g_g = jnp.tanh(gates[:, 2 * H:3 * H])
            o_g = jax.nn.sigmoid(gates[:, 3 * H:4 * H])
            c_new = f_g * c + i_g * g_g
            h_new = o_g * jnp.tanh(c_new)
            if masked:       # only traced for the final (padded) chunk
                valid = (t_blk * t_chunk + i) < seq_len
                h_new = jnp.where(valid, h_new, h)
                c_new = jnp.where(valid, c_new, c)
            y_ref[i] = h_new.astype(y_ref.dtype)   # lane-dense bf16 store
            return (h_new, c_new)

        u = max(1, min(2 if masked else unroll, t_chunk))
        h_fin, c_fin = lax.fori_loop(0, t_chunk, step,
                                     (h_scr[...], c_scr[...]), unroll=u)
        # h/c live in registers within the chunk; scratch only bridges chunks.
        h_scr[...] = h_fin
        c_scr[...] = c_fin

    needs_mask = (seq_len % t_chunk) != 0      # static
    if needs_mask:
        # Pay the per-step tail-mask selects only on the last time chunk.
        is_last = t_blk == n_t - 1
        pl.when(is_last)(lambda: run_chunk(True))
        pl.when(jnp.logical_not(is_last))(lambda: run_chunk(False))
    else:
        run_chunk(False)

    @pl.when(t_blk == n_t - 1)
    def _write_final():
        hT_ref[...] = h_scr[...]


# ---------------------------------------------------------------------------
# Host-side packing helpers (weights pre-transposed + gate-padded once)
# ---------------------------------------------------------------------------
def _pack_gate_weight(w, in_pad, H, H_pad):
    """PyTorch [4H, in_dim] -> transposed, gate-padded [in_pad, 4*H_pad]."""
    in_dim = w.shape[1]
    wt = w.T.astype(jnp.float32)              # [in_dim, 4H]
    blocks = []
    for k in range(4):
        blk = wt[:, k * H:(k + 1) * H]
        blk = jnp.pad(blk, ((0, in_pad - in_dim), (0, H_pad - H)))
        blocks.append(blk)
    return jnp.concatenate(blocks, axis=1)    # [in_pad, 4*H_pad]


def _pack_gate_vector(v, H, H_pad):
    blocks = [jnp.pad(v[k * H:(k + 1) * H], (0, H_pad - H)) for k in range(4)]
    return jnp.concatenate(blocks)            # [4*H_pad]


# ---------------------------------------------------------------------------
# One LSTM layer (time-major in, time-major out)
# ---------------------------------------------------------------------------
def lstm_layer_pallas(x_tm, w_ih, w_hh, b_ih, b_hh, init_h, init_c, *, chip=None):
    """x_tm: [T, B, Din] time-major.
    Returns (y_tm [T, B_run, H_pad] bf16, h_T [B_run, H_pad] f32)."""
    vmem_cap, num_cores = chip if chip is not None else _chip_info()
    T, B, Din = x_tm.shape
    H = w_hh.shape[1]
    H_pad = _round_up(H, 128)                 # lane-aligned gate slices
    D_pad = _round_up(Din, 128)
    G = 4 * H_pad

    # --- generation-aware time chunk: deeper slabs on 128 MiB parts ---------
    t_chunk = 16 if vmem_cap >= (100 << 20) else 8
    t_chunk = max(1, min(t_chunk, T))

    # --- batch tiling: split across TensorCores on v7x, one wide tile else --
    B_pad = _round_up(B, 8)
    if num_cores >= 2 and B_pad >= 16:
        b_tile = _round_up(-(-B_pad // num_cores), 8)   # >=2 parallel tiles
    else:
        b_tile = B_pad                                  # single-core: 1 tile

    def rec_block_bytes(tc, bt):
        return (2 * tc * bt * G * 2          # gx slab (bf16, double-buffered)
                + 2 * tc * bt * H_pad * 2    # y slab  (bf16, double-buffered)
                + 2 * H_pad * G * 2          # W_hh (budgeted conservatively)
                + 2 * bt * H_pad * 4         # hT
                + 2 * bt * H_pad * 4         # h/c scratch (f32)
                + 4 * H_pad * 4)             # h0/c0

    budget = int(vmem_cap * 0.6)
    while rec_block_bytes(t_chunk, b_tile) > budget and b_tile > 8:
        b_tile = _round_up(b_tile // 2, 8)
    while rec_block_bytes(t_chunk, b_tile) > budget and t_chunk > 1:
        t_chunk = max(1, t_chunk // 2)

    T_pad = _round_up(T, t_chunk)
    n_t = T_pad // t_chunk
    n_b = -(-B_pad // b_tile)
    B_run = n_b * b_tile
    # Deeper unroll for small tiles (latency-bound chain); 2 otherwise.
    unroll = 4 if (b_tile <= 16 or H_pad <= 256) else 2

    # ---- host-side layout plumbing (once, outside the recurrence) ----------
    x_p = jnp.pad(x_tm, ((0, T_pad - T), (0, B_run - B), (0, D_pad - Din)))
    x2d = x_p.reshape(T_pad * B_run, D_pad).astype(jnp.bfloat16)

    w_ih_t = _pack_gate_weight(w_ih, D_pad, H, H_pad).astype(jnp.bfloat16)
    w_hh_t = _pack_gate_weight(w_hh, H_pad, H, H_pad).astype(jnp.bfloat16)
    bias = _pack_gate_vector((b_ih + b_hh).astype(jnp.float32), H, H_pad)
    bias = bias.reshape(1, G)

    h0 = jnp.pad(init_h.reshape(1, H).astype(jnp.float32),
                 ((0, 0), (0, H_pad - H)))
    c0 = jnp.pad(init_c.reshape(1, H).astype(jnp.float32),
                 ((0, 0), (0, H_pad - H)))

    # ---- 1) batched input projection (bf16 MXU matmul, f32 acc, bf16 out) --
    # Row tile decoupled from the recurrence: largest 512-1024-row tile that
    # fits the VMEM budget (reaches HBM roofline instead of tm = B*t_chunk).
    M = T_pad * B_run
    xproj_budget = int(vmem_cap * 0.5)

    def xproj_bytes(t):
        return 2 * t * D_pad * 2 + 2 * t * G * 2 + 2 * D_pad * G * 2 + 2 * G * 4

    tm = 1024
    while tm > 64 and xproj_bytes(tm) > xproj_budget:
        tm //= 2
    tm = max(8, _round_up(min(tm, M), 8))
    M_pad = _round_up(M, tm)
    if M_pad > M:
        x2d = jnp.pad(x2d, ((0, M_pad - M), (0, 0)))

    gates_x = _input_projection(x2d, w_ih_t, bias, tm, vmem_cap)
    gates_x = gates_x[:M].reshape(T_pad, B_run, G)

    # ---- 2) serial recurrence, streamed in (batch, time) slabs -------------
    # TODO(synk): on v5e the gates_x HBM round trip could be removed entirely
    # by fusing the x-projection into this kernel (stream x, matmul per chunk).
    kernel = functools.partial(_recurrence_kernel, seq_len=T, t_chunk=t_chunk,
                               h_pad=H_pad, unroll=unroll)
    y_tm, h_T = pl.pallas_call(
        kernel,
        out_shape=(
            jax.ShapeDtypeStruct((T_pad, B_run, H_pad), jnp.bfloat16),
            jax.ShapeDtypeStruct((B_run, H_pad), jnp.float32),
        ),
        grid_spec=pltpu.PrefetchScalarGridSpec(
            num_scalar_prefetch=0,
            grid=(n_b, n_t),
            in_specs=[
                pl.BlockSpec((t_chunk, b_tile, G), lambda b, t: (t, b, 0)),
                _const_block_spec((H_pad, G), lambda b, t: (0, 0)),
                _const_block_spec((1, H_pad), lambda b, t: (0, 0)),
                _const_block_spec((1, H_pad), lambda b, t: (0, 0)),
            ],
            out_specs=(
                pl.BlockSpec((t_chunk, b_tile, H_pad), lambda b, t: (t, b, 0)),
                pl.BlockSpec((b_tile, H_pad), lambda b, t: (b, 0)),
            ),
            scratch_shapes=[
                pltpu.VMEM((b_tile, H_pad), jnp.float32),   # h (persists over t)
                pltpu.VMEM((b_tile, H_pad), jnp.float32),   # c
            ],
        ),
        compiler_params=pltpu.CompilerParams(
            dimension_semantics=("parallel", "arbitrary"),
            vmem_limit_bytes=_vmem_limit(rec_block_bytes(t_chunk, b_tile),
                                         vmem_cap)),
    )(gates_x, w_hh_t, h0, c0)

    return y_tm[:T], h_T


# ---------------------------------------------------------------------------
# EncoderLSTM forward (eval mode, input_lengths=None, bidir=False)
# ---------------------------------------------------------------------------
def init_encoder_params(key, input_size, num_units, nlayers):
    """weights ~ N(0, 0.1) (reset_parameters), biases zero, init_h/init_c zero."""
    params = []
    for i in range(nlayers):
        in_sz = input_size if i == 0 else num_units
        key, k1, k2 = jax.random.split(key, 3)
        params.append(dict(
            w_ih=0.1 * jax.random.normal(k1, (4 * num_units, in_sz), jnp.float32),
            w_hh=0.1 * jax.random.normal(k2, (4 * num_units, num_units), jnp.float32),
            b_ih=jnp.zeros((4 * num_units,), jnp.float32),
            b_hh=jnp.zeros((4 * num_units,), jnp.float32),
            init_h=jnp.zeros((1, 1, num_units), jnp.float32),
            init_c=jnp.zeros((1, 1, num_units), jnp.float32),
        ))
    return params


def encoder_lstm_forward(params, x, *, concat=True, return_last=False):
    """x: [B, T, input_size] batch-first. Eval mode (LockedDropout = identity)."""
    B, T, _ = x.shape
    H = params[0]["w_hh"].shape[1]
    chip = _chip_info()

    # Single transpose to time-major for the whole layer stack.
    cur = jnp.transpose(x, (1, 0, 2))                           # [T, B, D]

    outs = []
    for p in params:
        # TODO(synk): LockedDropout is training-only; identity in eval mode.
        y_tm, h_T = lstm_layer_pallas(cur, p["w_ih"], p["w_hh"],
                                      p["b_ih"], p["b_hh"],
                                      p["init_h"], p["init_c"], chip=chip)
        if return_last:
            outs.append(h_T[:B, :H].astype(jnp.float32))        # [B, H]
        else:
            outs.append(y_tm[:, :B, :H])                        # [T, B, H] bf16
        cur = y_tm  # bf16 padded time-major output feeds the next layer directly

    if return_last:
        return jnp.concatenate(outs, axis=-1) if concat else outs[-1]
    out = jnp.concatenate(outs, axis=-1) if concat else outs[-1]
    return jnp.transpose(out, (1, 0, 2)).astype(jnp.float32)    # back to [B, T, *]


# ---------------------------------------------------------------------------
# Pure-JAX f32 reference (lax.scan) for correctness check
# ---------------------------------------------------------------------------
def _lstm_layer_ref(x_btd, w_ih, w_hh, b_ih, b_hh, h0, c0):
    H = h0.shape[-1]
    b = (b_ih + b_hh)[None, :]

    def step(carry, x_t):
        h, c = carry
        gates = x_t @ w_ih.T + h @ w_hh.T + b
        i_g = jax.nn.sigmoid(gates[:, 0 * H:1 * H])
        f_g = jax.nn.sigmoid(gates[:, 1 * H:2 * H])
        g_g = jnp.tanh(gates[:, 2 * H:3 * H])
        o_g = jax.nn.sigmoid(gates[:, 3 * H:4 * H])
        c_new = f_g * c + i_g * g_g
        h_new = o_g * jnp.tanh(c_new)
        return (h_new, c_new), h_new

    (h_T, _), ys = lax.scan(step, (h0, c0), jnp.transpose(x_btd, (1, 0, 2)))
    return jnp.transpose(ys, (1, 0, 2)), h_T


def encoder_lstm_ref(params, x, *, concat=True, return_last=False):
    B = x.shape[0]
    output = x
    outputs = []
    for p in params:
        h0 = jnp.broadcast_to(p["init_h"][0], (B, p["init_h"].shape[-1]))
        c0 = jnp.broadcast_to(p["init_c"][0], (B, p["init_c"].shape[-1]))
        output, h_T = _lstm_layer_ref(
            output, p["w_ih"], p["w_hh"], p["b_ih"], p["b_hh"], h0, c0)
        outputs.append(h_T.reshape(B, -1) if return_last else output)
    return jnp.concatenate(outputs, axis=-1) if concat else outputs[-1]


if __name__ == "__main__":
    B, T, D, H, NLAYERS = 2, 8, 16, 32, 2

    key = jax.random.PRNGKey(0)
    kx, kp = jax.random.split(key)
    x = jax.random.normal(kx, (B, T, D), jnp.float32)
    params = init_encoder_params(kp, D, H, NLAYERS)

    out = encoder_lstm_forward(params, x, concat=True, return_last=False)
    out = jax.block_until_ready(out)
    assert out.shape == (B, T, NLAYERS * H), out.shape

    ref = jax.block_until_ready(
        encoder_lstm_ref(params, x, concat=True, return_last=False))
    # bf16 MXU operands / bf16 intermediate streams vs pure-f32 reference.
    np.testing.assert_allclose(np.asarray(out, dtype=np.float32),
                               np.asarray(ref), rtol=2e-2, atol=2e-2)

    print("KERNEL_OK")
</pallas_src>

<mosaic_0001>
module attributes {stable_mosaic.version = 11 : i64} {
  func.func @_xproj_kernel(%arg0: i32, %arg1: memref<64x128xbf16, #tpu.memory_space<vmem>>, %arg2: memref<128x512xbf16, #tpu.memory_space<vmem>>, %arg3: memref<1x512xf32, #tpu.memory_space<vmem>>, %arg4: memref<64x512xbf16, #tpu.memory_space<vmem>>) attributes {dimension_semantics = [#tpu.dimension_semantics<parallel>], iteration_bounds = array<i64: 1>, scalar_prefetch = 0 : i64, scratch_operands = 0 : i64, tpu.core_type = #tpu.core_type<tc>, window_params = [{transform_indices = @transform_0, window_bounds = array<i64: 64, 128>}, {pipeline_mode = #tpu.pipeline_mode<synchronous>, transform_indices = @transform_1, window_bounds = array<i64: 128, 512>}, {pipeline_mode = #tpu.pipeline_mode<synchronous>, transform_indices = @transform_2, window_bounds = array<i64: 1, 512>}, {transform_indices = @transform_3, window_bounds = array<i64: 64, 512>}]} {
    %c0 = arith.constant 0 : index
    %c0_0 = arith.constant 0 : index
    %0 = vector.load %arg1[%c0, %c0_0] : memref<64x128xbf16, #tpu.memory_space<vmem>>, vector<64x128xbf16>
    %c0_1 = arith.constant 0 : index
    %c0_2 = arith.constant 0 : index
    %1 = vector.load %arg2[%c0_1, %c0_2] : memref<128x512xbf16, #tpu.memory_space<vmem>>, vector<128x512xbf16>
    %cst = arith.constant dense<0.000000e+00> : vector<64x512xf32>
    %2 = tpu.matmul %0, %1, %cst {dimension_numbers = #tpu.dot_dimension_numbers<[1], [0], [0], [1], [0, 0, 1, 1], [], []>} : vector<64x128xbf16>, vector<128x512xbf16>, vector<64x512xf32> -> vector<64x512xf32>
    %c0_3 = arith.constant 0 : index
    %c0_4 = arith.constant 0 : index
    %3 = vector.load %arg3[%c0_3, %c0_4] : memref<1x512xf32, #tpu.memory_space<vmem>>, vector<1x512xf32>
    %4 = vector.broadcast %3 : vector<1x512xf32> to vector<64x512xf32>
    %5 = arith.addf %2, %4 : vector<64x512xf32>
    %6 = arith.truncf %5 : vector<64x512xf32> to vector<64x512xbf16>
    %c0_5 = arith.constant 0 : index
    %c0_6 = arith.constant 0 : index
    %7 = vector.load %arg4[%c0_5, %c0_6] : memref<64x512xbf16, #tpu.memory_space<vmem>>, vector<64x512xbf16>
    tpu.vector_store %arg4[%c0_5, %c0_6], %6 {strides = array<i32>} : memref<64x512xbf16, #tpu.memory_space<vmem>>, vector<64x512xbf16>,
    return
  }
  func.func @transform_0(%arg0: i32) -> (i32, i32) {
    %c0_i32 = arith.constant 0 : i32
    %c0_i32_0 = arith.constant 0 : i32
    return %arg0, %c0_i32 : i32, i32
  }
  func.func @transform_1(%arg0: i32) -> (i32, i32) {
    %c0_i32 = arith.constant 0 : i32
    %c0_i32_0 = arith.constant 0 : i32
    %c0_i32_1 = arith.constant 0 : i32
    return %c0_i32, %c0_i32_0 : i32, i32
  }
  func.func @transform_2(%arg0: i32) -> (i32, i32) {
    %c0_i32 = arith.constant 0 : i32
    %c0_i32_0 = arith.constant 0 : i32
    %c0_i32_1 = arith.constant 0 : i32
    return %c0_i32, %c0_i32_0 : i32, i32
  }
  func.func @transform_3(%arg0: i32) -> (i32, i32) {
    %c0_i32 = arith.constant 0 : i32
    %c0_i32_0 = arith.constant 0 : i32
    return %arg0, %c0_i32 : i32, i32
  }
}

</mosaic_0001>

<bundles_post_ra>
// kernel: tpu_custom_call.1
= control target key start
LH: loop header
LB: loop body
LE: loop exit
PB: predicated region body
PF: predicated region fallthrough
CT: control target
= control target key end

     0   :  { %8 = vsyncpa [#allocation3], 0  ;;  %s887_s0 = inlined_call_operand.hbm [shape: bf16[64,128], index: 0, kind: input, shape index: {}]   ;;  %s888_s1 = inlined_call_operand.hbm [shape: bf16[128,512], index: 1, kind: input, shape index: {}]   ;;  %s889_s2 = inlined_call_operand.vmem [shape: f32[1,512], index: 2, kind: input, shape index: {}]   ;;  %s890_s3 = inlined_call_operand.hbm [shape: bf16[64,512], index: 3, kind: output, shape index: {}]  }
   0x1   :  { %9 = vsyncpa [#allocation6], 0 }
   0x2   :  { %10 = vsyncpa [#allocation4], 0  ;;  %s766_s12 = smov [#allocation2]   ;;  %s694_s16 = scalar_lea.hbm %s887_s0, 512 }
   0x3   :  { %s16_s13 = sshll.u32 %s766_s12, 4  ;;  %p695_p0 = scmp.ne.s32.totalorder %s887_s0, %s694_s16  ;;  %s17_s13 = int_to_ptr.vmem [resolvable:$true] %s16_s13 }
   0x4   :  { %p698_p1 = scmp.lt.u32.totalorder %s694_s16, %s887_s0 }
   0x6   :  { %p700_p2 = pnand %p698_p1, %p695_p0 }
   0x8   :  { %703 = shalt.err (!%p700_p2)
}
   0x9   :  { %s704_s21 = scalar_lea.vmem %s17_s13, 512  ;;  %p709_p4 = scmp.lt.s32.totalorder %s17_s13, %s17_s13 }
   0xa   :  { %p705_p3 = scmp.ne.s32.totalorder %s17_s13, %s704_s21  ;;  %p710_p5 = scmp.lt.s32.totalorder %s704_s21, %s704_s21 }
   0xc   :  { %p711_p6 = por %p710_p5, %p709_p4 }
   0xe   :  { %p712_p7 = pnand %p711_p6, %p705_p3 }
  0x10   :  { %715 = shalt.err (!%p712_p7)
}
  0x11   :  { %s767_s22 = smov 64   ;;  %s768_s23 = smov 4  }
  0x12   :  { %22 = dma.hbm_to_vmem [thread:$0]  %s887_s0, 512, %s17_s13, [#allocation3], %s767_s22, %s767_s22, %s768_s23  }
  0x13   :  { %s769_s26 = smov [#allocation5]   ;;  %s716_s30 = scalar_lea.hbm %s888_s1, 4096 }
  0x14   :  { %s28_s27 = sshll.u32 %s769_s26, 4  ;;  %p717_p8 = scmp.ne.s32.totalorder %s888_s1, %s716_s30  ;;  %s29_s27 = int_to_ptr.vmem [resolvable:$true] %s28_s27 }
  0x15   :  { %p720_p9 = scmp.lt.u32.totalorder %s716_s30, %s888_s1 }
  0x17   :  { %p722_p10 = pnand %p720_p9, %p717_p8 }
  0x19   :  { %725 = shalt.err (!%p722_p10)
}
  0x1a   :  { %s726_s8 = scalar_lea.vmem %s29_s27, 4096  ;;  %p731_p12 = scmp.lt.s32.totalorder %s29_s27, %s29_s27 }
  0x1b   :  { %p727_p11 = scmp.ne.s32.totalorder %s29_s27, %s726_s8  ;;  %p732_p13 = scmp.lt.s32.totalorder %s726_s8, %s726_s8 }
  0x1d   :  { %p733_p0 = por %p732_p13, %p731_p12 }
  0x1f   :  { %p734_p1 = pnand %p733_p0, %p727_p11 }
  0x21   :  { %737 = shalt.err (!%p734_p1)
}
  0x22   :  { %s770_s0 = smov 256   ;;  %s771_s9 = smov 16  }
  0x23   :  { %34 = dma.hbm_to_vmem [thread:$0]  %s888_s1, 4096, %s29_s27, [#allocation6], %s770_s0, %s770_s0, %s771_s9  }
  0x24   :  { %760 = dma.done.wait [#allocation3], 512  }
  0x25   :  { %761 = vsyncadd [#allocation3], 4294966784 }
  0x26   :  { %762 = dma.done.wait [#allocation6], 4096  }
  0x27   :  { %763 = vsyncadd [#allocation6], 4294963200  ;;  %v772_v0 = vmov 0   ;;  %v642_v1 = vld [vmem:[#allocation5 + $0x4] ss:$16 sps:$4 sm:$0xff]   ;;  %v691_v34 = vld [vmem:[#allocation2 + $0x8] sm:$0xff]   ;;  %v86_v37 = vlaneseq }
  0x28   :  { %322 = vmatprep.mubr.bf16.mxu0 %v772_v0  ;;  %395 = vmatprep.mubr.bf16.mxu1 %v772_v0  ;;  %v644_v2 = vld [vmem:[#allocation5 + $0xc] ss:$16 sps:$4 sm:$0xff]   ;;  %v646_v3 = vld [vmem:[#allocation5] ss:$16 sps:$4 sm:$0xff]   ;;  %v647_v4 = vld [vmem:[#allocation5 + $0x8] ss:$16 sps:$4 sm:$0xff]  }
  0x29   :  { %290 = vmatprep.subr.bf16.mxu0 %v642_v1  ;;  %363 = vmatprep.subr.bf16.mxu1 %v644_v2  ;;  %v648_v5 = vld [vmem:[#allocation5 + $0x24] ss:$16 sps:$4 sm:$0xff]   ;;  %v650_v6 = vld [vmem:[#allocation5 + $0x2c] ss:$16 sps:$4 sm:$0xff]   ;;  %v652_v7 = vld [vmem:[#allocation5 + $0x20] ss:$16 sps:$4 sm:$0xff]  }
  0x2a   :  { %291 = vmatpush1.bf16.msra.mxu0 %v646_v3  ;;  %364 = vmatpush1.bf16.msra.mxu1 %v647_v4  ;;  %v653_v8 = vld [vmem:[#allocation5 + $0x28] ss:$16 sps:$4 sm:$0xff]   ;;  %v654_v9 = vld [vmem:[#allocation5 + $0x44] ss:$16 sps:$4 sm:$0xff]   ;;  %v656_v10 = vld [vmem:[#allocation5 + $0x4c] ss:$16 sps:$4 sm:$0xff]  }
  0x2b   :  { %292 = vmatprep.subr.bf16.mxu0 %v648_v5  ;;  %365 = vmatprep.subr.bf16.mxu1 %v650_v6  ;;  %v658_v11 = vld [vmem:[#allocation5 + $0x40] ss:$16 sps:$4 sm:$0xff]   ;;  %v659_v12 = vld [vmem:[#allocation5 + $0x48] ss:$16 sps:$4 sm:$0xff]   ;;  %v660_v13 = vld [vmem:[#allocation5 + $0x64] ss:$16 sps:$4 sm:$0xff]  }
  0x2c   :  { %v662_v14 = vld [vmem:[#allocation5 + $0x6c] ss:$16 sps:$4 sm:$0xff]   ;;  %v664_v15 = vld [vmem:[#allocation5 + $0x60] ss:$16 sps:$4 sm:$0xff]   ;;  %v665_v16 = vld [vmem:[#allocation5 + $0x68] ss:$16 sps:$4 sm:$0xff]  }
  0x2d   :  { %v666_v17 = vld [vmem:[#allocation5 + $0x84] ss:$16 sps:$4 sm:$0xff]   ;;  %v668_v18 = vld [vmem:[#allocation5 + $0x8c] ss:$16 sps:$4 sm:$0xff]   ;;  %v670_v19 = vld [vmem:[#allocation5 + $0x80] ss:$16 sps:$4 sm:$0xff]  }
  0x2e   :  { %293 = vmatpush1.bf16.msra.mxu0 %v652_v7  ;;  %366 = vmatpush1.bf16.msra.mxu1 %v653_v8  ;;  %v671_v20 = vld [vmem:[#allocation5 + $0x88] ss:$16 sps:$4 sm:$0xff]   ;;  %v672_v21 = vld [vmem:[#allocation5 + $0xa4] ss:$16 sps:$4 sm:$0xff]   ;;  %v674_v22 = vld [vmem:[#allocation5 + $0xac] ss:$16 sps:$4 sm:$0xff]  }
  0x2f   :  { %294 = vmatprep.subr.bf16.mxu0 %v654_v9  ;;  %367 = vmatprep.subr.bf16.mxu1 %v656_v10  ;;  %v676_v23 = vld [vmem:[#allocation5 + $0xa0] ss:$16 sps:$4 sm:$0xff]   ;;  %v677_v24 = vld [vmem:[#allocation5 + $0xa8] ss:$16 sps:$4 sm:$0xff]   ;;  %v678_v25 = vld [vmem:[#allocation5 + $0xc4] ss:$16 sps:$4 sm:$0xff]  }
  0x30   :  { %v680_v26 = vld [vmem:[#allocation5 + $0xcc] ss:$16 sps:$4 sm:$0xff]   ;;  %v682_v27 = vld [vmem:[#allocation5 + $0xc0] ss:$16 sps:$4 sm:$0xff]   ;;  %v683_v28 = vld [vmem:[#allocation5 + $0xc8] ss:$16 sps:$4 sm:$0xff]  }
  0x31   :  { %v684_v29 = vld [vmem:[#allocation5 + $0xe4] ss:$16 sps:$4 sm:$0xff]   ;;  %v686_v30 = vld [vmem:[#allocation5 + $0xec] ss:$16 sps:$4 sm:$0xff]   ;;  %v688_v31 = vld [vmem:[#allocation5 + $0xe0] ss:$16 sps:$4 sm:$0xff]  }
  0x32   :  { %295 = vmatpush1.bf16.msra.mxu0 %v658_v11  ;;  %368 = vmatpush1.bf16.msra.mxu1 %v659_v12  ;;  %v689_v32 = vld [vmem:[#allocation5 + $0xe8] ss:$16 sps:$4 sm:$0xff]   ;;  %v690_v33 = vld [vmem:[#allocation2] sm:$0xff]   ;;  %v692_v35 = vld [vmem:[#allocation2 + $0x10] sm:$0xff]   ;;  %v87_v38 = vshrl.u32 %v86_v37, 7 }
  0x33   :  { %296 = vmatprep.subr.bf16.mxu0 %v660_v13  ;;  %369 = vmatprep.subr.bf16.mxu1 %v662_v14  ;;  %v693_v36 = vld [vmem:[#allocation2 + $0x18] sm:$0xff]   ;;  %v84_v41 = vld [vmem:[%s889_s2] sm:$0xf]  ;;  %s773_s2 = smov [#allocation7]  }
  0x34   :  { %v88_v39 = vsub.s32 0, %v87_v38  ;;  %v96_v40 = vsub.s32 2, %v87_v38  ;;  %v92_v42 = vsub.s32 1, %v87_v38  ;;  %v100_v43 = vsub.s32 3, %v87_v38  ;;  %s553_s13 = sshll.u32 %s773_s2, 4  ;;  %s554_s13 = int_to_ptr.vmem [resolvable:$true] %s553_s13 }
  0x35   :  { %s738_s14 = scalar_lea.vmem %s554_s13, 2048  ;;  %p743_p3 = scmp.lt.s32.totalorder %s554_s13, %s554_s13 }
  0x36   :  { %297 = vmatpush1.bf16.msra.mxu0 %v664_v15  ;;  %370 = vmatpush1.bf16.msra.mxu1 %v665_v16  ;;  %v832_v44 = vrot.slane %v84_v41, %v88_v39  ;;  %v834_v45 = vrot.slane %v84_v41, %v96_v40  ;;  %v836_v46 = vrot.slane %v84_v41, %v92_v42  ;;  %p739_p2 = scmp.ne.s32.totalorder %s554_s13, %s738_s14  ;;  %p744_p4 = scmp.lt.s32.totalorder %s738_s14, %s738_s14 }
  0x37   :  { %298 = vmatprep.subr.bf16.mxu0 %v666_v17  ;;  %371 = vmatprep.subr.bf16.mxu1 %v668_v18  ;;  %v838_v47 = vrot.slane %v84_v41, %v100_v43 }
  0x38   :  { %p745_p5 = por %p744_p4, %p743_p3 }
  0x3a   :  { %299 = vmatpush1.bf16.msra.mxu0 %v670_v19  ;;  %372 = vmatpush1.bf16.msra.mxu1 %v671_v20  ;;  %p746_p6 = pnand %p745_p5, %p739_p2 }
  0x3b   :  { %300 = vmatprep.subr.bf16.mxu0 %v672_v21  ;;  %373 = vmatprep.subr.bf16.mxu1 %v674_v22 }
  0x3e   :  { %301 = vmatpush1.bf16.msra.mxu0 %v676_v23  ;;  %374 = vmatpush1.bf16.msra.mxu1 %v677_v24 }
  0x3f   :  { %302 = vmatprep.subr.bf16.mxu0 %v678_v25  ;;  %375 = vmatprep.subr.bf16.mxu1 %v680_v26 }
  0x42   :  { %303 = vmatpush1.bf16.msra.mxu0 %v682_v27  ;;  %376 = vmatpush1.bf16.msra.mxu1 %v683_v28 }
  0x43   :  { %304 = vmatprep.subr.bf16.mxu0 %v684_v29  ;;  %377 = vmatprep.subr.bf16.mxu1 %v686_v30 }
  0x46   :  { %305 = vmatpush1.bf16.msra.mxu0 %v688_v31  ;;  %378 = vmatpush1.bf16.msra.mxu1 %v689_v32 }
  0x49   :  { %323 = vmatmul.mubr.bf16.vlgmr.msra.gmra.mrb[0].mxu0 %v690_v33  ;;  %396 = vmatmul.mubr.bf16.vlgmr.msra.gmra.mrb[0].mxu1 %v690_v33 }
  0x4a   :  { %332 = vmatprep.mubr.bf16.mxu0 %v772_v0  ;;  %405 = vmatprep.mubr.bf16.mxu1 %v772_v0 }
  0x51   :  { %333 = vmatmul.mubr.bf16.gmra.mrb[4].mxu0 %v691_v34  ;;  %406 = vmatmul.mubr.bf16.gmra.mrb[4].mxu1 %v691_v34 }
  0x52   :  { %342 = vmatprep.mubr.bf16.mxu0 %v772_v0  ;;  %415 = vmatprep.mubr.bf16.mxu1 %v772_v0 }
  0x59   :  { %343 = vmatmul.mubr.bf16.gmra.mrb[8].mxu0 %v692_v35  ;;  %416 = vmatmul.mubr.bf16.gmra.mrb[8].mxu1 %v692_v35 }
  0x5a   :  { %352 = vmatprep.mubr.bf16.mxu0 %v772_v0  ;;  %425 = vmatprep.mubr.bf16.mxu1 %v772_v0 }
  0x61   :  { %353 = vmatmul.mubr.bf16.gmra.mrb[12].mxu0 %v693_v36  ;;  %426 = vmatmul.mubr.bf16.gmra.mrb[12].mxu1 %v693_v36 }
 0x11c   :  { %v324_v48 = vpop.f32.mrb[0].mxu0  ;;  %v397_v49 = vpop.f32.mrb[0].mxu1 }
 0x11d   :  { %v325_v50 = vadd.f32 %v324_v48, %v832_v44  ;;  %v398_v51 = vadd.f32 %v397_v49, %v834_v45  ;;  %v326_v52 = vpop.f32.mrb[1].mxu0  ;;  %v399_v53 = vpop.f32.mrb[1].mxu1 }
 0x11e   :  { %v327_v54 = vadd.f32 %v326_v52, %v836_v46  ;;  %v400_v55 = vadd.f32 %v399_v53, %v838_v47  ;;  %v328_v56 = vpop.f32.mrb[2].mxu0  ;;  %v401_v57 = vpop.f32.mrb[2].mxu1 }
 0x11f   :  { %v329_v58 = vadd.f32 %v328_v56, %v832_v44  ;;  %v402_v59 = vadd.f32 %v401_v57, %v834_v45  ;;  %v330_v60 = vpop.f32.mrb[3].mxu0  ;;  %v403_v61 = vpop.f32.mrb[3].mxu1 }
 0x120   :  { %v618_v62 = vpack.c.bf16 %v327_v54, %v325_v50  ;;  %v619_v63 = vpack.c.bf16 %v400_v55, %v398_v51  ;;  %v331_v0 = vadd.f32 %v330_v60, %v836_v46  ;;  %v404_v1 = vadd.f32 %v403_v61, %v838_v47 }
 0x122   :  { %532 = vst [vmem:[#allocation7] sm:$0xff] %v618_v62  ;;  %533 = vst [vmem:[#allocation7 + $0x8] sm:$0xff] %v619_v63  ;;  %v620_v2 = vpack.c.bf16 %v331_v0, %v329_v58  ;;  %v621_v3 = vpack.c.bf16 %v404_v1, %v402_v59 }
 0x124   :  { %534 = vst [vmem:[#allocation7 + $0x10] sm:$0xff] %v620_v2  ;;  %535 = vst [vmem:[#allocation7 + $0x18] sm:$0xff] %v621_v3  ;;  %v334_v4 = vpop.f32.mrb[4].mxu0  ;;  %v407_v5 = vpop.f32.mrb[4].mxu1 }
 0x125   :  { %v335_v6 = vadd.f32 %v334_v4, %v832_v44  ;;  %v408_v7 = vadd.f32 %v407_v5, %v834_v45  ;;  %v336_v8 = vpop.f32.mrb[5].mxu0  ;;  %v409_v9 = vpop.f32.mrb[5].mxu1 }
 0x126   :  { %v337_v10 = vadd.f32 %v336_v8, %v836_v46  ;;  %v410_v11 = vadd.f32 %v409_v9, %v838_v47  ;;  %v338_v12 = vpop.f32.mrb[6].mxu0  ;;  %v411_v13 = vpop.f32.mrb[6].mxu1 }
 0x127   :  { %v339_v14 = vadd.f32 %v338_v12, %v832_v44  ;;  %v412_v15 = vadd.f32 %v411_v13, %v834_v45  ;;  %v340_v16 = vpop.f32.mrb[7].mxu0  ;;  %v413_v17 = vpop.f32.mrb[7].mxu1 }
 0x128   :  { %v622_v18 = vpack.c.bf16 %v337_v10, %v335_v6  ;;  %v623_v19 = vpack.c.bf16 %v410_v11, %v408_v7  ;;  %v341_v20 = vadd.f32 %v340_v16, %v836_v46  ;;  %v414_v21 = vadd.f32 %v413_v17, %v838_v47 }
 0x12a   :  { %536 = vst [vmem:[#allocation7 + $0x20] sm:$0xff] %v622_v18  ;;  %537 = vst [vmem:[#allocation7 + $0x28] sm:$0xff] %v623_v19  ;;  %v624_v22 = vpack.c.bf16 %v341_v20, %v339_v14  ;;  %v625_v23 = vpack.c.bf16 %v414_v21, %v412_v15 }
 0x12c   :  { %538 = vst [vmem:[#allocation7 + $0x30] sm:$0xff] %v624_v22  ;;  %539 = vst [vmem:[#allocation7 + $0x38] sm:$0xff] %v625_v23  ;;  %v344_v24 = vpop.f32.mrb[8].mxu0  ;;  %v417_v25 = vpop.f32.mrb[8].mxu1 }
 0x12d   :  { %v345_v26 = vadd.f32 %v344_v24, %v832_v44  ;;  %v418_v27 = vadd.f32 %v417_v25, %v834_v45  ;;  %v346_v28 = vpop.f32.mrb[9].mxu0  ;;  %v419_v29 = vpop.f32.mrb[9].mxu1 }
 0x12e   :  { %v347_v30 = vadd.f32 %v346_v28, %v836_v46  ;;  %v420_v31 = vadd.f32 %v419_v29, %v838_v47  ;;  %v348_v32 = vpop.f32.mrb[10].mxu0  ;;  %v421_v33 = vpop.f32.mrb[10].mxu1 }
 0x12f   :  { %v349_v34 = vadd.f32 %v348_v32, %v832_v44  ;;  %v422_v35 = vadd.f32 %v421_v33, %v834_v45  ;;  %v350_v36 = vpop.f32.mrb[11].mxu0  ;;  %v423_v37 = vpop.f32.mrb[11].mxu1 }
 0x130   :  { %v626_v38 = vpack.c.bf16 %v347_v30, %v345_v26  ;;  %v627_v39 = vpack.c.bf16 %v420_v31, %v418_v27  ;;  %v351_v40 = vadd.f32 %v350_v36, %v836_v46  ;;  %v424_v41 = vadd.f32 %v423_v37, %v838_v47 }
 0x132   :  { %540 = vst [vmem:[#allocation7 + $0x40] sm:$0xff] %v626_v38  ;;  %541 = vst [vmem:[#allocation7 + $0x48] sm:$0xff] %v627_v39  ;;  %v628_v42 = vpack.c.bf16 %v351_v40, %v349_v34  ;;  %v629_v43 = vpack.c.bf16 %v424_v41, %v422_v35 }
 0x134   :  { %542 = vst [vmem:[#allocation7 + $0x50] sm:$0xff] %v628_v42  ;;  %543 = vst [vmem:[#allocation7 + $0x58] sm:$0xff] %v629_v43  ;;  %v354_v48 = vpop.f32.mrb[12].mxu0  ;;  %v427_v49 = vpop.f32.mrb[12].mxu1 }
 0x135   :  { %v355_v50 = vadd.f32 %v354_v48, %v832_v44  ;;  %v428_v51 = vadd.f32 %v427_v49, %v834_v45  ;;  %v356_v52 = vpop.f32.mrb[13].mxu0  ;;  %v429_v53 = vpop.f32.mrb[13].mxu1 }
 0x136   :  { %v357_v54 = vadd.f32 %v356_v52, %v836_v46  ;;  %v430_v55 = vadd.f32 %v429_v53, %v838_v47  ;;  %v358_v56 = vpop.f32.mrb[14].mxu0  ;;  %v431_v57 = vpop.f32.mrb[14].mxu1 }
 0x137   :  { %v359_v58 = vadd.f32 %v358_v56, %v832_v44  ;;  %v432_v59 = vadd.f32 %v431_v57, %v834_v45  ;;  %v360_v60 = vpop.f32.mrb[15].mxu0  ;;  %v433_v61 = vpop.f32.mrb[15].mxu1 }
 0x138   :  { %v630_v62 = vpack.c.bf16 %v357_v54, %v355_v50  ;;  %v631_v63 = vpack.c.bf16 %v430_v55, %v428_v51  ;;  %v361_v0 = vadd.f32 %v360_v60, %v836_v46  ;;  %v434_v1 = vadd.f32 %v433_v61, %v838_v47 }
 0x13a   :  { %544 = vst [vmem:[#allocation7 + $0x60] sm:$0xff] %v630_v62  ;;  %545 = vst [vmem:[#allocation7 + $0x68] sm:$0xff] %v631_v63  ;;  %v632_v2 = vpack.c.bf16 %v361_v0, %v359_v58  ;;  %v633_v3 = vpack.c.bf16 %v434_v1, %v432_v59 }
 0x13c   :  { %546 = vst [vmem:[#allocation7 + $0x70] sm:$0xff] %v632_v2  ;;  %547 = vst [vmem:[#allocation7 + $0x78] sm:$0xff] %v633_v3 }
 0x13d   :  { %749 = shalt.err (!%p746_p6)
}
 0x13e   :  { %s750_s17 = scalar_lea.hbm %s890_s3, 2048 }
 0x13f   :  { %p751_p7 = scmp.ne.s32.totalorder %s890_s3, %s750_s17  ;;  %p754_p8 = scmp.lt.u32.totalorder %s750_s17, %s890_s3 }
 0x141   :  { %p756_p9 = pnand %p754_p8, %p751_p7 }
 0x143   :  { %759 = shalt.err (!%p756_p9)
}
 0x144   :  { %559 = dma.vmem_to_hbm [thread:$0]  %s554_s13, 2048, %s890_s3, [#allocation4], %s770_s0, %s770_s0, %s771_s9  }
 0x145   :  { %764 = dma.done.wait [#allocation4], 2048  }
 0x146   :  { %765 = vsyncadd [#allocation4], 4294965248 }
 0x147   :  { %563 = vsyncpa [#allocation3], 1 }
 0x148   :  { %564 = vsyncpa [#allocation6], 1 }
 0x149   :  { %565 = vsyncpa [#allocation4], 1 }

</bundles_post_ra>
